<compile_context>
chip_gen: v5e
topology: v5e:2x2
jax: 0.10.0
libtpu: 0.0.40
codegen_flags: <defaults>
</compile_context>

<pallas_src>
import functools

import jax
import jax.numpy as jnp
from jax.experimental import pallas as pl
from jax.experimental.pallas import tpu as pltpu

_LANE = 128                 # box index maps to lanes
_SUB = 8                    # sublane granularity
_MAX_ROWS = 1024            # max sublane rows per grid step (131072 boxes)
_PAD_BOXES = _SUB * _LANE   # pad N only to a multiple of 1024 boxes
_PI = 3.1415926             # constant used by the PyTorch module


def _kfiou_kernel(pred_ref, tgt_ref, out_ref, *, fun, beta, eps):
    # pred_ref / tgt_ref : (5, R, 128) VMEM tiles, leading axis = [x,y,w,h,ang]
    # out_ref            : (R, 128)
    two_rad = 2.0 * _PI / 180.0

    # ---- pred-side covariance terms first (shorter live ranges) ------------
    wp = jnp.clip(pred_ref[2], 1e-7, 1e7)
    hp = jnp.clip(pred_ref[3], 1e-7, 1e7)
    wp2 = wp * wp
    hp2 = hp * hp
    sum_p = 0.125 * (wp2 + hp2)
    dif_p = 0.125 * (wp2 - hp2)
    c2p = jnp.cos(pred_ref[4] * two_rad)
    s2p = jnp.sin(pred_ref[4] * two_rad)
    ap = sum_p + dif_p * c2p          # Sigma_p[0,0]
    bp = dif_p * s2p                  # Sigma_p[0,1]
    dp = sum_p - dif_p * c2p          # Sigma_p[1,1]
    vb_p = wp * hp                    # 4*sqrt(det Sigma_p)

    # ---- target-side covariance terms ---------------------------------------
    wt = jnp.clip(tgt_ref[2], 1e-7, 1e7)
    ht = jnp.clip(tgt_ref[3], 1e-7, 1e7)
    wt2 = wt * wt
    ht2 = ht * ht
    sum_t = 0.125 * (wt2 + ht2)
    dif_t = 0.125 * (wt2 - ht2)
    c2t = jnp.cos(tgt_ref[4] * two_rad)
    s2t = jnp.sin(tgt_ref[4] * two_rad)
    at = sum_t + dif_t * c2t
    bt = dif_t * s2t
    dt = sum_t - dif_t * c2t
    vb_t = wt * ht

    # ---- smooth-L1 centre loss ----------------------------------------------
    dx = jnp.abs(pred_ref[0] - tgt_ref[0])
    dy = jnp.abs(pred_ref[1] - tgt_ref[1])
    half_beta = 0.5 * beta
    inv_beta_half = 0.5 / beta
    xy_loss = (jnp.where(dx < beta, inv_beta_half * dx * dx, dx - half_beta)
               + jnp.where(dy < beta, inv_beta_half * dy * dy, dy - half_beta))

    # ---- KFIoU ---------------------------------------------------------------
    m00 = ap + at
    m01 = bp + bt
    m11 = dp + dt
    det_m = m00 * m11 - m01 * m01     # det(Sigma_p + Sigma_t) >= 0

    # Vb = 4*sqrt(det Sigma_p * det Sigma_t / det M)
    vb = 0.25 * vb_p * vb_t * jax.lax.rsqrt(det_m)
    # det_m can round to exactly 0 -> rsqrt = inf; mirror torch's NaN->0 path
    # (which hits NaN via the explicit inverse) by zeroing any non-finite Vb.
    vb = jnp.where(jnp.isfinite(vb), vb, 0.0)

    kfiou = vb / (vb_p + vb_t - vb + eps)
    if fun == "ln":
        kf_loss = -jnp.log(kfiou + eps)
    elif fun == "exp":
        kf_loss = jnp.exp(1.0 - kfiou) - 1.0
    else:                             # 'none'
        kf_loss = 1.0 - kfiou

    out_ref[...] = jnp.maximum(xy_loss + kf_loss, 0.0)


def _kfiou_pallas(pred_t, tgt_t, fun, beta, eps):
    """pred_t / tgt_t: (5, n_rows, 128) float32, n_rows a multiple of 8."""
    n_rows = pred_t.shape[1]
    # Cap the tile so the parallel grid has >= 2 steps for non-trivial N
    # (feeds both TensorCores on v7x; harmless on v5e/v6e).
    tile_rows = min(_MAX_ROWS, _SUB * pl.cdiv(pl.cdiv(n_rows, 2), _SUB))
    grid = (pl.cdiv(n_rows, tile_rows),)   # last block may be ragged

    kernel = functools.partial(_kfiou_kernel, fun=fun,
                               beta=float(beta), eps=float(eps))
    return pl.pallas_call(
        kernel,
        out_shape=jax.ShapeDtypeStruct((n_rows, _LANE), jnp.float32),
        grid=grid,
        in_specs=[
            pl.BlockSpec((5, tile_rows, _LANE), lambda i: (0, i, 0)),
            pl.BlockSpec((5, tile_rows, _LANE), lambda i: (0, i, 0)),
        ],
        out_specs=pl.BlockSpec((tile_rows, _LANE), lambda i: (i, 0)),
        compiler_params=pltpu.CompilerParams(
            dimension_semantics=("parallel",),
            # max tile uses ~11.5 MB of double-buffered VMEM; 32 MiB is within
            # the scoped default on v5e/v6e/v7x.
            vmem_limit_bytes=32 * 1024 * 1024,
        ),
    )(pred_t, tgt_t)


def _pad_and_tile(soa, n_pad):
    # (5, N) -> (5, n_pad//128, 128); zero padding is benign (w/h clamped).
    n = soa.shape[1]
    if n_pad != n:
        soa = jnp.pad(soa, ((0, 0), (0, n_pad - n)))
    return soa.reshape(5, n_pad // _LANE, _LANE)


@functools.partial(jax.jit, static_argnames=("fun", "beta", "eps"))
def kfiou_loss_soa(pred_soa, target_soa, fun="none", beta=1.0 / 9.0, eps=1e-6):
    """KFIoU loss for struct-of-arrays inputs: (5, N) rows [x,y,w,h,angle_deg]."""
    pred_soa = jnp.asarray(pred_soa, jnp.float32)
    target_soa = jnp.asarray(target_soa, jnp.float32)
    assert pred_soa.shape == target_soa.shape and pred_soa.shape[0] == 5
    n = pred_soa.shape[1]
    n_pad = pl.cdiv(max(n, 1), _PAD_BOXES) * _PAD_BOXES
    out = _kfiou_pallas(_pad_and_tile(pred_soa, n_pad),
                        _pad_and_tile(target_soa, n_pad),
                        fun, beta, eps)
    return out.reshape(-1)[:n]


@functools.partial(jax.jit, static_argnames=("fun", "beta", "eps"))
def kfiou_loss(pred, target, fun="none", beta=1.0 / 9.0, eps=1e-6):
    """JAX/Pallas equivalent of KFiou(fun, beta, eps).forward(pred, target).

    pred/target: (N, 5) rows of [x, y, w, h, angle_deg] (AoS, like the module).
    """
    pred = jnp.asarray(pred, jnp.float32).reshape(-1, 5)
    target = jnp.asarray(target, jnp.float32).reshape(-1, 5)
    assert pred.shape[0] == target.shape[0]
    # TODO(synk): the (N,5)->(5,N) transpose is one extra (fused) HBM pass;
    # callers that can produce SoA data should use kfiou_loss_soa directly,
    # or keep this call inside their own jit so the transpose fuses with the
    # producer of pred/target.
    return kfiou_loss_soa(pred.T, target.T, fun=fun, beta=beta, eps=eps)


def _kfiou_ref(pred, target, fun="none", beta=1.0 / 9.0, eps=1e-6):
    """Pure-JAX reference mirroring the PyTorch forward (matrix form)."""
    pred = jnp.asarray(pred, jnp.float32).reshape(-1, 5)
    target = jnp.asarray(target, jnp.float32).reshape(-1, 5)

    def xy_wh_r_2_xy_sigma(xywhr):
        xy = xywhr[..., :2]
        wh = jnp.clip(xywhr[..., 2:4], 1e-7, 1e7)
        r = _PI * xywhr[..., 4] / 180.0
        cos_r = jnp.cos(r)
        sin_r = jnp.sin(r)
        R = jnp.stack([cos_r, -sin_r, sin_r, cos_r], axis=-1).reshape(-1, 2, 2)
        S = 0.5 * wh[..., None] * jnp.eye(2, dtype=jnp.float32)
        sigma = R @ jnp.square(S) @ jnp.transpose(R, (0, 2, 1))
        return xy, sigma

    xy_p, Sp = xy_wh_r_2_xy_sigma(pred)
    xy_t, St = xy_wh_r_2_xy_sigma(target)
    diff = jnp.abs(xy_p - xy_t)
    xy_loss = jnp.where(diff < beta, 0.5 * diff * diff / beta,
                        diff - 0.5 * beta).sum(-1)
    Vb_p = 4 * jnp.sqrt(jnp.linalg.det(Sp))
    Vb_t = 4 * jnp.sqrt(jnp.linalg.det(St))
    K = Sp @ jnp.linalg.inv(Sp + St)
    Sigma = Sp - K @ Sp
    Vb = 4 * jnp.sqrt(jnp.linalg.det(Sigma))
    Vb = jnp.where(jnp.isnan(Vb), 0.0, Vb)
    KFIoU = Vb / (Vb_p + Vb_t - Vb + eps)
    if fun == "ln":
        kf_loss = -jnp.log(KFIoU + eps)
    elif fun == "exp":
        kf_loss = jnp.exp(1.0 - KFIoU) - 1.0
    else:
        kf_loss = 1.0 - KFIoU
    return jnp.clip(xy_loss + kf_loss, 0.0, None)


def _make_boxes(key, n):
    k1, k2, k3, k4, k5 = jax.random.split(key, 5)
    pred_xy = jax.random.normal(k1, (n, 2), jnp.float32) * 2.0
    pred_wh = jnp.abs(jax.random.normal(k2, (n, 2), jnp.float32)) + 0.5
    pred_ang = jax.random.uniform(k3, (n, 1), jnp.float32,
                                  minval=-90.0, maxval=90.0)
    pred = jnp.concatenate([pred_xy, pred_wh, pred_ang], axis=1)
    tgt_xy = pred_xy + 0.3 * jax.random.normal(k4, (n, 2), jnp.float32)
    tgt_wh = pred_wh * 1.2 + 0.1
    tgt_ang = pred_ang + 10.0 * jax.random.normal(k5, (n, 1), jnp.float32)
    target = jnp.concatenate([tgt_xy, tgt_wh, tgt_ang], axis=1)
    return pred, target


if __name__ == "__main__":
    key = jax.random.PRNGKey(0)
    kA, kB = jax.random.split(key, 2)

    # Small, module-consistent shapes: (num_boxes, 5) = [x, y, w, h, angle_deg]
    n = 16
    pred, target = _make_boxes(kA, n)

    out = kfiou_loss(pred, target)            # fun='none' (module default)
    jax.block_until_ready(out)
    ref = _kfiou_ref(pred, target)
    assert out.shape == (n,)
    assert jnp.allclose(out, ref, atol=1e-4, rtol=1e-4), (out, ref)

    # 'ln' variant + SoA entry point on the same data.
    out_ln = kfiou_loss_soa(pred.T, target.T, fun="ln")
    jax.block_until_ready(out_ln)
    ref_ln = _kfiou_ref(pred, target, fun="ln")
    assert jnp.allclose(out_ln, ref_ln, atol=1e-4, rtol=1e-4), (out_ln, ref_ln)

    # A size that exercises the ragged last block / multi-step parallel grid.
    n2 = 2500
    pred2, target2 = _make_boxes(kB, n2)
    out2 = kfiou_loss(pred2, target2)
    jax.block_until_ready(out2)
    ref2 = _kfiou_ref(pred2, target2)
    assert out2.shape == (n2,)
    assert jnp.allclose(out2, ref2, atol=1e-4, rtol=1e-4)

    print("KERNEL_OK")
</pallas_src>

<mosaic_0001>
module attributes {stable_mosaic.version = 11 : i64} {
  func.func @_kfiou_kernel(%arg0: i32, %arg1: memref<5x8x128xf32, #tpu.memory_space<vmem>>, %arg2: memref<5x8x128xf32, #tpu.memory_space<vmem>>, %arg3: memref<8x128xf32, #tpu.memory_space<vmem>>) attributes {dimension_semantics = [#tpu.dimension_semantics<parallel>], iteration_bounds = array<i64: 1>, scalar_prefetch = 0 : i64, scratch_operands = 0 : i64, tpu.core_type = #tpu.core_type<tc>, window_params = [{transform_indices = @transform_0, window_bounds = array<i64: 5, 8, 128>}, {transform_indices = @transform_1, window_bounds = array<i64: 5, 8, 128>}, {transform_indices = @transform_2, window_bounds = array<i64: 8, 128>}]} {
    %c2 = arith.constant 2 : index
    %c0 = arith.constant 0 : index
    %c0_0 = arith.constant 0 : index
    %0 = vector.load %arg1[%c2, %c0, %c0_0] : memref<5x8x128xf32, #tpu.memory_space<vmem>>, vector<1x8x128xf32>
    %1 = vector.shape_cast %0 : vector<1x8x128xf32> to vector<8x128xf32>
    %cst = arith.constant 1.000000e-07 : f32
    %cst_1 = arith.constant 1.000000e+07 : f32
    %2 = vector.broadcast %cst : f32 to vector<8x128xf32>
    %3 = arith.maximumf %2, %1 : vector<8x128xf32>
    %4 = vector.broadcast %cst_1 : f32 to vector<8x128xf32>
    %5 = arith.minimumf %4, %3 : vector<8x128xf32>
    %c3 = arith.constant 3 : index
    %c0_2 = arith.constant 0 : index
    %c0_3 = arith.constant 0 : index
    %6 = vector.load %arg1[%c3, %c0_2, %c0_3] : memref<5x8x128xf32, #tpu.memory_space<vmem>>, vector<1x8x128xf32>
    %7 = vector.shape_cast %6 : vector<1x8x128xf32> to vector<8x128xf32>
    %cst_4 = arith.constant 1.000000e-07 : f32
    %cst_5 = arith.constant 1.000000e+07 : f32
    %8 = vector.broadcast %cst_4 : f32 to vector<8x128xf32>
    %9 = arith.maximumf %8, %7 : vector<8x128xf32>
    %10 = vector.broadcast %cst_5 : f32 to vector<8x128xf32>
    %11 = arith.minimumf %10, %9 : vector<8x128xf32>
    %12 = arith.mulf %5, %5 : vector<8x128xf32>
    %13 = arith.mulf %11, %11 : vector<8x128xf32>
    %14 = arith.addf %12, %13 : vector<8x128xf32>
    %cst_6 = arith.constant 1.250000e-01 : f32
    %15 = vector.broadcast %cst_6 : f32 to vector<8x128xf32>
    %16 = arith.mulf %15, %14 : vector<8x128xf32>
    %17 = arith.subf %12, %13 : vector<8x128xf32>
    %cst_7 = arith.constant 1.250000e-01 : f32
    %18 = vector.broadcast %cst_7 : f32 to vector<8x128xf32>
    %19 = arith.mulf %18, %17 : vector<8x128xf32>
    %c4 = arith.constant 4 : index
    %c0_8 = arith.constant 0 : index
    %c0_9 = arith.constant 0 : index
    %20 = vector.load %arg1[%c4, %c0_8, %c0_9] : memref<5x8x128xf32, #tpu.memory_space<vmem>>, vector<1x8x128xf32>
    %21 = vector.shape_cast %20 : vector<1x8x128xf32> to vector<8x128xf32>
    %cst_10 = arith.constant 0.0349065848 : f32
    %22 = vector.broadcast %cst_10 : f32 to vector<8x128xf32>
    %23 = arith.mulf %21, %22 : vector<8x128xf32>
    %24 = math.cos %23 : vector<8x128xf32>
    %c4_11 = arith.constant 4 : index
    %c0_12 = arith.constant 0 : index
    %c0_13 = arith.constant 0 : index
    %25 = vector.load %arg1[%c4_11, %c0_12, %c0_13] : memref<5x8x128xf32, #tpu.memory_space<vmem>>, vector<1x8x128xf32>
    %26 = vector.shape_cast %25 : vector<1x8x128xf32> to vector<8x128xf32>
    %cst_14 = arith.constant 0.0349065848 : f32
    %27 = vector.broadcast %cst_14 : f32 to vector<8x128xf32>
    %28 = arith.mulf %26, %27 : vector<8x128xf32>
    %29 = math.sin %28 : vector<8x128xf32>
    %30 = arith.mulf %19, %24 : vector<8x128xf32>
    %31 = arith.addf %16, %30 : vector<8x128xf32>
    %32 = arith.mulf %19, %29 : vector<8x128xf32>
    %33 = arith.mulf %19, %24 : vector<8x128xf32>
    %34 = arith.subf %16, %33 : vector<8x128xf32>
    %35 = arith.mulf %5, %11 : vector<8x128xf32>
    %c2_15 = arith.constant 2 : index
    %c0_16 = arith.constant 0 : index
    %c0_17 = arith.constant 0 : index
    %36 = vector.load %arg2[%c2_15, %c0_16, %c0_17] : memref<5x8x128xf32, #tpu.memory_space<vmem>>, vector<1x8x128xf32>
    %37 = vector.shape_cast %36 : vector<1x8x128xf32> to vector<8x128xf32>
    %cst_18 = arith.constant 1.000000e-07 : f32
    %cst_19 = arith.constant 1.000000e+07 : f32
    %38 = vector.broadcast %cst_18 : f32 to vector<8x128xf32>
    %39 = arith.maximumf %38, %37 : vector<8x128xf32>
    %40 = vector.broadcast %cst_19 : f32 to vector<8x128xf32>
    %41 = arith.minimumf %40, %39 : vector<8x128xf32>
    %c3_20 = arith.constant 3 : index
    %c0_21 = arith.constant 0 : index
    %c0_22 = arith.constant 0 : index
    %42 = vector.load %arg2[%c3_20, %c0_21, %c0_22] : memref<5x8x128xf32, #tpu.memory_space<vmem>>, vector<1x8x128xf32>
    %43 = vector.shape_cast %42 : vector<1x8x128xf32> to vector<8x128xf32>
    %cst_23 = arith.constant 1.000000e-07 : f32
    %cst_24 = arith.constant 1.000000e+07 : f32
    %44 = vector.broadcast %cst_23 : f32 to vector<8x128xf32>
    %45 = arith.maximumf %44, %43 : vector<8x128xf32>
    %46 = vector.broadcast %cst_24 : f32 to vector<8x128xf32>
    %47 = arith.minimumf %46, %45 : vector<8x128xf32>
    %48 = arith.mulf %41, %41 : vector<8x128xf32>
    %49 = arith.mulf %47, %47 : vector<8x128xf32>
    %50 = arith.addf %48, %49 : vector<8x128xf32>
    %cst_25 = arith.constant 1.250000e-01 : f32
    %51 = vector.broadcast %cst_25 : f32 to vector<8x128xf32>
    %52 = arith.mulf %51, %50 : vector<8x128xf32>
    %53 = arith.subf %48, %49 : vector<8x128xf32>
    %cst_26 = arith.constant 1.250000e-01 : f32
    %54 = vector.broadcast %cst_26 : f32 to vector<8x128xf32>
    %55 = arith.mulf %54, %53 : vector<8x128xf32>
    %c4_27 = arith.constant 4 : index
    %c0_28 = arith.constant 0 : index
    %c0_29 = arith.constant 0 : index
    %56 = vector.load %arg2[%c4_27, %c0_28, %c0_29] : memref<5x8x128xf32, #tpu.memory_space<vmem>>, vector<1x8x128xf32>
    %57 = vector.shape_cast %56 : vector<1x8x128xf32> to vector<8x128xf32>
    %cst_30 = arith.constant 0.0349065848 : f32
    %58 = vector.broadcast %cst_30 : f32 to vector<8x128xf32>
    %59 = arith.mulf %57, %58 : vector<8x128xf32>
    %60 = math.cos %59 : vector<8x128xf32>
    %c4_31 = arith.constant 4 : index
    %c0_32 = arith.constant 0 : index
    %c0_33 = arith.constant 0 : index
    %61 = vector.load %arg2[%c4_31, %c0_32, %c0_33] : memref<5x8x128xf32, #tpu.memory_space<vmem>>, vector<1x8x128xf32>
    %62 = vector.shape_cast %61 : vector<1x8x128xf32> to vector<8x128xf32>
    %cst_34 = arith.constant 0.0349065848 : f32
    %63 = vector.broadcast %cst_34 : f32 to vector<8x128xf32>
    %64 = arith.mulf %62, %63 : vector<8x128xf32>
    %65 = math.sin %64 : vector<8x128xf32>
    %66 = arith.mulf %55, %60 : vector<8x128xf32>
    %67 = arith.addf %52, %66 : vector<8x128xf32>
    %68 = arith.mulf %55, %65 : vector<8x128xf32>
    %69 = arith.mulf %55, %60 : vector<8x128xf32>
    %70 = arith.subf %52, %69 : vector<8x128xf32>
    %71 = arith.mulf %41, %47 : vector<8x128xf32>
    %c0_35 = arith.constant 0 : index
    %c0_36 = arith.constant 0 : index
    %c0_37 = arith.constant 0 : index
    %72 = vector.load %arg1[%c0_35, %c0_36, %c0_37] : memref<5x8x128xf32, #tpu.memory_space<vmem>>, vector<1x8x128xf32>
    %73 = vector.shape_cast %72 : vector<1x8x128xf32> to vector<8x128xf32>
    %c0_38 = arith.constant 0 : index
    %c0_39 = arith.constant 0 : index
    %c0_40 = arith.constant 0 : index
    %74 = vector.load %arg2[%c0_38, %c0_39, %c0_40] : memref<5x8x128xf32, #tpu.memory_space<vmem>>, vector<1x8x128xf32>
    %75 = vector.shape_cast %74 : vector<1x8x128xf32> to vector<8x128xf32>
    %76 = arith.subf %73, %75 : vector<8x128xf32>
    %77 = math.absf %76 : vector<8x128xf32>
    %c1 = arith.constant 1 : index
    %c0_41 = arith.constant 0 : index
    %c0_42 = arith.constant 0 : index
    %78 = vector.load %arg1[%c1, %c0_41, %c0_42] : memref<5x8x128xf32, #tpu.memory_space<vmem>>, vector<1x8x128xf32>
    %79 = vector.shape_cast %78 : vector<1x8x128xf32> to vector<8x128xf32>
    %c1_43 = arith.constant 1 : index
    %c0_44 = arith.constant 0 : index
    %c0_45 = arith.constant 0 : index
    %80 = vector.load %arg2[%c1_43, %c0_44, %c0_45] : memref<5x8x128xf32, #tpu.memory_space<vmem>>, vector<1x8x128xf32>
    %81 = vector.shape_cast %80 : vector<1x8x128xf32> to vector<8x128xf32>
    %82 = arith.subf %79, %81 : vector<8x128xf32>
    %83 = math.absf %82 : vector<8x128xf32>
    %cst_46 = arith.constant 0.111111112 : f32
    %84 = vector.broadcast %cst_46 : f32 to vector<8x128xf32>
    %85 = arith.cmpf olt, %77, %84 : vector<8x128xf32>
    %cst_47 = arith.constant 4.500000e+00 : f32
    %86 = vector.broadcast %cst_47 : f32 to vector<8x128xf32>
    %87 = arith.mulf %86, %77 : vector<8x128xf32>
    %88 = arith.mulf %87, %77 : vector<8x128xf32>
    %cst_48 = arith.constant 0.055555556 : f32
    %89 = vector.broadcast %cst_48 : f32 to vector<8x128xf32>
    %90 = arith.subf %77, %89 : vector<8x128xf32>
    %91 = arith.select %85, %88, %90 : vector<8x128xi1>, vector<8x128xf32>
    %cst_49 = arith.constant 0.111111112 : f32
    %92 = vector.broadcast %cst_49 : f32 to vector<8x128xf32>
    %93 = arith.cmpf olt, %83, %92 : vector<8x128xf32>
    %cst_50 = arith.constant 4.500000e+00 : f32
    %94 = vector.broadcast %cst_50 : f32 to vector<8x128xf32>
    %95 = arith.mulf %94, %83 : vector<8x128xf32>
    %96 = arith.mulf %95, %83 : vector<8x128xf32>
    %cst_51 = arith.constant 0.055555556 : f32
    %97 = vector.broadcast %cst_51 : f32 to vector<8x128xf32>
    %98 = arith.subf %83, %97 : vector<8x128xf32>
    %99 = arith.select %93, %96, %98 : vector<8x128xi1>, vector<8x128xf32>
    %100 = arith.addf %91, %99 : vector<8x128xf32>
    %101 = arith.addf %31, %67 : vector<8x128xf32>
    %102 = arith.addf %32, %68 : vector<8x128xf32>
    %103 = arith.addf %34, %70 : vector<8x128xf32>
    %104 = arith.mulf %101, %103 : vector<8x128xf32>
    %105 = arith.mulf %102, %102 : vector<8x128xf32>
    %106 = arith.subf %104, %105 : vector<8x128xf32>
    %cst_52 = arith.constant 2.500000e-01 : f32
    %107 = vector.broadcast %cst_52 : f32 to vector<8x128xf32>
    %108 = arith.mulf %107, %35 : vector<8x128xf32>
    %109 = arith.mulf %108, %71 : vector<8x128xf32>
    %110 = math.rsqrt %106 : vector<8x128xf32>
    %111 = arith.mulf %109, %110 : vector<8x128xf32>
    %112 = tpu.weird %111 : vector<8x128xf32> -> vector<8x128xi1>
    %cst_53 = arith.constant dense<true> : vector<8x128xi1>
    %113 = arith.xori %112, %cst_53 : vector<8x128xi1>
    %cst_54 = arith.constant 0.000000e+00 : f32
    %114 = vector.broadcast %cst_54 : f32 to vector<8x128xf32>
    %115 = arith.select %113, %111, %114 : vector<8x128xi1>, vector<8x128xf32>
    %116 = arith.addf %35, %71 : vector<8x128xf32>
    %117 = arith.subf %116, %115 : vector<8x128xf32>
    %cst_55 = arith.constant 9.99999997E-7 : f32
    %118 = vector.broadcast %cst_55 : f32 to vector<8x128xf32>
    %119 = arith.addf %117, %118 : vector<8x128xf32>
    %120 = arith.divf %115, %119 : vector<8x128xf32>
    %cst_56 = arith.constant 1.000000e+00 : f32
    %121 = vector.broadcast %cst_56 : f32 to vector<8x128xf32>
    %122 = arith.subf %121, %120 : vector<8x128xf32>
    %123 = arith.addf %100, %122 : vector<8x128xf32>
    %cst_57 = arith.constant 0.000000e+00 : f32
    %124 = vector.broadcast %cst_57 : f32 to vector<8x128xf32>
    %125 = arith.maximumf %123, %124 : vector<8x128xf32>
    %c0_58 = arith.constant 0 : index
    %c0_59 = arith.constant 0 : index
    %126 = vector.load %arg3[%c0_58, %c0_59] : memref<8x128xf32, #tpu.memory_space<vmem>>, vector<8x128xf32>
    tpu.vector_store %arg3[%c0_58, %c0_59], %125 {strides = array<i32>} : memref<8x128xf32, #tpu.memory_space<vmem>>, vector<8x128xf32>,
    return
  }
  func.func @transform_0(%arg0: i32) -> (i32, i32, i32) {
    %c0_i32 = arith.constant 0 : i32
    %c0_i32_0 = arith.constant 0 : i32
    %c0_i32_1 = arith.constant 0 : i32
    return %c0_i32, %arg0, %c0_i32_0 : i32, i32, i32
  }
  func.func @transform_1(%arg0: i32) -> (i32, i32, i32) {
    %c0_i32 = arith.constant 0 : i32
    %c0_i32_0 = arith.constant 0 : i32
    %c0_i32_1 = arith.constant 0 : i32
    return %c0_i32, %arg0, %c0_i32_0 : i32, i32, i32
  }
  func.func @transform_2(%arg0: i32) -> (i32, i32) {
    %c0_i32 = arith.constant 0 : i32
    %c0_i32_0 = arith.constant 0 : i32
    return %arg0, %c0_i32 : i32, i32
  }
}

</mosaic_0001>

<bundles_post_ra>
// kernel: kfiou_loss_soa.1
= control target key start
LH: loop header
LB: loop body
LE: loop exit
PB: predicated region body
PF: predicated region fallthrough
CT: control target
= control target key end

     0   :  { %v776_v23 = vmov 683565275   ;;  %v777_v25 = vmov 2475754826   ;;  %v778_v27 = vmov 2131351028   ;;  %s1006_s0 = inlined_call_operand.vmem [shape: f32[5,8,128], index: 0, kind: input, shape index: {}]   ;;  %s1007_s1 = inlined_call_operand.vmem [shape: f32[5,8,128], index: 1, kind: input, shape index: {}]   ;;  %s1008_s2 = inlined_call_operand.vmem [shape: f32[8,128], index: 2, kind: output, shape index: {}]  }
   0x1   :  { %v744_v0 = vld [vmem:[%s1006_s0 + $0x20] sm:$0xff]  ;;  %v779_v29 = vmov 2102212464   ;;  %v780_v31 = vmov 920167782  }
   0x2   :  { %v802_v1 = vmul.f32 0.034906585, %v744_v0  ;;  %v753_v2 = vld [vmem:[%s1007_s1 + $0x20] sm:$0xff]  ;;  %v781_v40 = vmov 1326507024  }
   0x3   :  { %v809_v5 = vmul.f32 0.034906585, %v753_v2 }
   0x4   :  { %v28_v3 = vand.u32 2147483647, %v802_v1  ;;  %v31_v4 = vand.u32 2139095040, %v802_v1 }
   0x5   :  { %v362_v8 = vand.u32 2139095040, %v809_v5  ;;  %v359_v9 = vand.u32 2147483647, %v809_v5 }
   0x6   :  { %v35_v6 = vand.u32 8388607, %v28_v3  ;;  %v32_v7 = vshrl.u32 %v31_v4, 23 }
   0x7   :  { %v363_v11 = vshrl.u32 %v362_v8, 23  ;;  %v366_v15 = vand.u32 8388607, %v359_v9 }
   0x8   :  { %v745_v10 = vadd.s32 4294967169, %v32_v7  ;;  %v36_v12 = vor.u32 8388608, %v35_v6 }
   0x9   :  { %v754_v14 = vadd.s32 4294967169, %v363_v11  ;;  %v367_v21 = vor.u32 8388608, %v366_v15 }
   0xa   :  { %v38_v13 = vadd.s32 1, %v745_v10  ;;  %v817_v18 = vshll.u32 %v36_v12, 8 }
   0xb   :  { %v369_v16 = vadd.s32 1, %v754_v14  ;;  %v833_v59 = vshll.u32 %v367_v21, 8 }
   0xc   :  { %vm39_vm0 = vcmp.gt.s32.totalorder %v38_v13, 0  ;;  %v77_v33 = vand.u32 65535, %v817_v18  ;;  %v78_v58 = vshrl.u32 %v817_v18, 16 }
   0xd   :  { %v40_v17 = vsel %vm39_vm0, %v38_v13, 0  ;;  %vm370_vm1 = vcmp.gt.s32.totalorder %v369_v16, 0 }
   0xe   :  { %v42_v19 = vand.u32 31, %v40_v17  ;;  %v41_v20 = vshrl.u32 %v40_v17, 5  ;;  %v371_v34 = vsel %vm370_vm1, %v369_v16, 0 }
   0xf   :  { %v827_v47 = vand.u32 31, %v371_v34  ;;  %v840_v63 = vshrl.u32 %v371_v34, 5 }
  0x10   :  { %v43_v22 = vsub.s32 32, %v42_v19  ;;  %v45_v24 = vshll.u32 %v776_v23, %v42_v19  ;;  %v48_v26 = vshll.u32 %v777_v25, %v42_v19  ;;  %v51_v28 = vshll.u32 %v778_v27, %v42_v19 }
  0x11   :  { %v54_v30 = vshll.u32 %v779_v29, %v42_v19  ;;  %v57_v32 = vshll.u32 %v780_v31, %v42_v19  ;;  %vm60_vm2 = vcmp.lt.s32.totalorder %v41_v20, 1  ;;  %vm61_vm3 = vcmp.lt.s32.totalorder %v41_v20, 2 }
  0x12   :  { %v44_v35 = vshrl.u32 %v776_v23, %v43_v22  ;;  %v46_v36 = vshrl.u32 %v777_v25, %v43_v22  ;;  %v49_v37 = vshrl.u32 %v778_v27, %v43_v22  ;;  %v52_v38 = vshrl.u32 %v779_v29, %v43_v22 }
  0x13   :  { %v55_v39 = vshrl.u32 %v780_v31, %v43_v22  ;;  %v58_v41 = vshrl.u32 %v781_v40, %v43_v22  ;;  %vm63_vm4 = vcmp.lt.s32.totalorder %v41_v20, 4  ;;  %vm62_vm5 = vcmp.lt.s32.totalorder %v41_v20, 3 }
  0x14   :  { %v47_v42 = vor.u32 %v46_v36, %v45_v24  ;;  %v50_v43 = vor.u32 %v49_v37, %v48_v26  ;;  %v53_v44 = vor.u32 %v52_v38, %v51_v28  ;;  %v830_v55 = vsub.s32 32, %v827_v47 }
  0x15   :  { %v56_v45 = vor.u32 %v55_v39, %v54_v30  ;;  %v59_v46 = vor.u32 %v58_v41, %v57_v32  ;;  %v376_v7 = vshll.u32 %v776_v23, %v827_v47  ;;  %v379_v10 = vshll.u32 %v777_v25, %v827_v47 }
  0x16   :  { %v64_v48 = vsel %vm60_vm2, %v44_v35, %v47_v42  ;;  %v65_v49 = vsel %vm63_vm4, %v53_v44, 2102212464  ;;  %v68_v50 = vsel %vm60_vm2, %v47_v42, %v50_v43  ;;  %v72_v51 = vsel %vm60_vm2, %v50_v43, %v53_v44 }
  0x17   :  { %v66_v52 = vsel %vm62_vm5, %v50_v43, %v65_v49  ;;  %v69_v53 = vsel %vm63_vm4, %v56_v45, 920167782  ;;  %v73_v54 = vsel %vm63_vm4, %v59_v46, 1326507024  ;;  %v377_v8 = vshrl.u32 %v777_v25, %v830_v55 }
  0x18   :  { %v70_v56 = vsel %vm62_vm5, %v53_v44, %v69_v53  ;;  %v74_v57 = vsel %vm62_vm5, %v56_v45, %v73_v54  ;;  %v836_v60 = vsel %vm61_vm3, %v64_v48, %v66_v52  ;;  %v380_v11 = vshrl.u32 %v778_v27, %v830_v55 }
  0x19   :  { %v71_v61 = vsel %vm61_vm3, %v68_v50, %v70_v56  ;;  %v75_v62 = vsel %vm61_vm3, %v72_v51, %v74_v57  ;;  %v382_v15 = vshll.u32 %v778_v27, %v827_v47  ;;  %v848_v36 = vor.u32 %v377_v8, %v376_v7 }
  0x1a   :  { %v79_v0 = vand.u32 65535, %v75_v62  ;;  %v80_v2 = vshrl.u32 %v75_v62, 16  ;;  %v101_v4 = vand.u32 65535, %v71_v61  ;;  %v102_v6 = vshrl.u32 %v71_v61, 16 }
  0x1b   :  { %v782_v37 = vmov 0   ;;  %v385_v42 = vshll.u32 %v779_v29, %v827_v47  ;;  %v857_v45 = vor.u32 %v380_v11, %v379_v10  ;;  %v386_v50 = vshrl.u32 %v780_v31, %v830_v55 }
  0x1c   :  { %v81_v12 = vmul.u32 %v79_v0, %v77_v33  ;;  %v82_v13 = vmul.u32 %v80_v2, %v77_v33  ;;  %v83_v14 = vmul.u32 %v79_v0, %v78_v58  ;;  %v84_v16 = vmul.u32 %v80_v2, %v78_v58 }
  0x1d   :  { %v103_v17 = vmul.u32 %v101_v4, %v77_v33  ;;  %v104_v19 = vmul.u32 %v102_v6, %v77_v33  ;;  %v105_v20 = vmul.u32 %v101_v4, %v78_v58  ;;  %v106_v26 = vmul.u32 %v102_v6, %v78_v58 }
  0x1e   :  { %v85_v21 = vshll.u32 %v82_v13, 16  ;;  %v86_v22 = vshrl.u32 %v82_v13, 16  ;;  %v87_v24 = vshll.u32 %v83_v14, 16  ;;  %v88_v28 = vshrl.u32 %v83_v14, 16 }
  0x1f   :  { %v107_v30 = vshll.u32 %v104_v19, 16  ;;  %v108_v32 = vshrl.u32 %v104_v19, 16  ;;  %v109_v34 = vshll.u32 %v105_v20, 16  ;;  %v110_v35 = vshrl.u32 %v105_v20, 16 }
  0x20   :  { %vm89_vm6 = vc.u32 %v81_v12, %v85_v21  ;;  %v91_v25 = vadd.s32 %v85_v21, %v81_v12  ;;  %v383_v33 = vshrl.u32 %v779_v29, %v830_v55  ;;  %v388_v52 = vshll.u32 %v780_v31, %v827_v47 }
  0x21   :  { %v90_v27 = vsel %vm89_vm6, 1, %v782_v37  ;;  %vm111_vm7 = vc.u32 %v103_v17, %v107_v30  ;;  %v113_v38 = vadd.s32 %v107_v30, %v103_v17  ;;  %v389_v29 = vshrl.u32 %v781_v40, %v830_v55 }
  0x22   :  { %v92_v39 = vadd.s32 %v90_v27, %v84_v16  ;;  %vm93_vm8 = vc.u32 %v91_v25, %v87_v24  ;;  %v112_v41 = vsel %vm111_vm7, 1, %v782_v37  ;;  %v384_v49 = vor.u32 %v383_v33, %v382_v15 }
  0x23   :  { %v94_v43 = vsel %vm93_vm8, 1, %v782_v37  ;;  %v114_v44 = vadd.s32 %v112_v41, %v106_v26  ;;  %vm115_vm9 = vc.u32 %v113_v38, %v109_v34  ;;  %vm391_vm10 = vcmp.lt.s32.totalorder %v840_v63, 1 }
  0x24   :  { %v96_v46 = vadd.s32 %v94_v43, %v92_v39  ;;  %v116_v48 = vsel %vm115_vm9, 1, %v782_v37  ;;  %v867_v54 = vadd.s32 %v113_v38, %v109_v34  ;;  %v387_v56 = vor.u32 %v386_v50, %v385_v42 }
  0x25   :  { %v118_v51 = vadd.s32 %v116_v48, %v114_v44  ;;  %vm393_vm11 = vcmp.lt.s32.totalorder %v840_v63, 3  ;;  %v390_v58 = vor.u32 %v389_v29, %v388_v52  ;;  %vm392_vm12 = vcmp.lt.s32.totalorder %v840_v63, 2 }
  0x26   :  { %v97_v53 = vadd.s32 %v96_v46, %v86_v22  ;;  %vm394_vm13 = vcmp.lt.s32.totalorder %v840_v63, 4  ;;  %v399_v31 = vsel %vm391_vm10, %v848_v36, %v857_v45  ;;  %v408_v0 = vand.u32 65535, %v833_v59 }
  0x27   :  { %v119_v57 = vadd.s32 %v118_v51, %v108_v32  ;;  %v400_v40 = vsel %vm394_vm13, %v387_v56, 920167782  ;;  %v409_v2 = vshrl.u32 %v833_v59, 16  ;;  %v121_v4 = vmul.u32 %v817_v18, %v836_v60 }
  0x28   :  { %v872_v61 = vadd.s32 %v97_v53, %v88_v28  ;;  %v401_v62 = vsel %vm393_vm11, %v384_v49, %v400_v40  ;;  %v403_v7 = vsel %vm391_vm10, %v857_v45, %v384_v49  ;;  %v404_v10 = vsel %vm394_vm13, %v390_v58, 1326507024 }
  0x29   :  { %v120_v47 = vadd.s32 %v119_v57, %v110_v35  ;;  %v402_v6 = vsel %vm392_vm12, %v399_v31, %v401_v62  ;;  %v405_v13 = vsel %vm393_vm11, %v387_v56, %v404_v10  ;;  %v375_v39 = vshrl.u32 %v776_v23, %v830_v55 }
  0x2a   :  { %vm123_vm14 = vc.u32 %v872_v61, %v867_v54  ;;  %v432_v11 = vand.u32 65535, %v402_v6  ;;  %v433_v12 = vshrl.u32 %v402_v6, 16  ;;  %v406_v60 = vsel %vm392_vm12, %v403_v7, %v405_v13 }
  0x2b   :  { %v124_v8 = vadd.s32 1, %v120_v47  ;;  %v410_v16 = vand.u32 65535, %v406_v60  ;;  %v411_v17 = vshrl.u32 %v406_v60, 16  ;;  %v396_v42 = vsel %vm394_vm13, %v384_v49, 2102212464 }
  0x2c   :  { %v435_v14 = vmul.u32 %v433_v12, %v408_v0  ;;  %v434_v19 = vmul.u32 %v432_v11, %v408_v0  ;;  %v436_v20 = vmul.u32 %v432_v11, %v409_v2  ;;  %v437_v27 = vmul.u32 %v433_v12, %v409_v2 }
  0x2d   :  { %v125_v18 = vsel %vm123_vm14, %v124_v8, %v120_v47  ;;  %v412_v24 = vmul.u32 %v410_v16, %v408_v0  ;;  %v413_v26 = vmul.u32 %v411_v17, %v408_v0  ;;  %v414_v28 = vmul.u32 %v410_v16, %v409_v2 }
  0x2e   :  { %v126_v15 = vadd.s32 %v125_v18, %v121_v4  ;;  %v438_v21 = vshll.u32 %v435_v14, 16  ;;  %v440_v30 = vshll.u32 %v436_v20, 16  ;;  %v415_v34 = vmul.u32 %v411_v17, %v409_v2 }
  0x2f   :  { %v416_v25 = vshll.u32 %v413_v26, 16  ;;  %v418_v35 = vshll.u32 %v414_v28, 16  ;;  %v417_v48 = vshrl.u32 %v413_v26, 16  ;;  %v439_v52 = vshrl.u32 %v435_v14, 16 }
  0x30   :  { %v127_v22 = vadd.s32 536870912, %v126_v15  ;;  %vm442_vm15 = vc.u32 %v434_v19, %v438_v21  ;;  %v444_v38 = vadd.s32 %v438_v21, %v434_v19  ;;  %v419_v53 = vshrl.u32 %v414_v28, 16 }
  0x31   :  { %vm420_vm0 = vc.u32 %v412_v24, %v416_v25  ;;  %v422_v41 = vadd.s32 %v416_v25, %v412_v24  ;;  %v443_v44 = vsel %vm442_vm15, 1, %v782_v37  ;;  %v441_v49 = vshrl.u32 %v436_v20, 16 }
  0x32   :  { %v899_v32 = vshrl.u32 %v127_v22, 30  ;;  %v421_v43 = vsel %vm420_vm0, 1, %v782_v37  ;;  %vm446_vm1 = vc.u32 %v444_v38, %v440_v30  ;;  %v445_v29 = vadd.s32 %v443_v44, %v437_v27 }
  0x33   :  { %v423_v50 = vadd.s32 %v421_v43, %v415_v34  ;;  %vm424_vm2 = vc.u32 %v422_v41, %v418_v35  ;;  %v447_v23 = vsel %vm446_vm1, 1, %v782_v37  ;;  %v395_v47 = vsel %vm391_vm10, %v375_v39, %v848_v36 }
  0x34   :  { %v129_v33 = vshll.u32 %v899_v32, 30  ;;  %v425_v51 = vsel %vm424_vm2, 1, %v782_v37  ;;  %v449_v57 = vadd.s32 %v447_v23, %v445_v29  ;;  %v397_v62 = vsel %vm393_vm11, %v857_v45, %v396_v42 }
  0x35   :  { %v427_v56 = vadd.s32 %v425_v51, %v423_v50  ;;  %v448_v37 = vadd.s32 %v444_v38, %v440_v30  ;;  %v398_v7 = vsel %vm392_vm12, %v395_v47, %v397_v62  ;;  %v122_v8 = vadd.s32 %v867_v54, %v872_v61 }
  0x36   :  { %v130_v46 = vsub.s32 %v126_v15, %v129_v33  ;;  %v450_v0 = vadd.s32 %v449_v57, %v439_v52  ;;  %v452_v45 = vmul.u32 %v833_v59, %v398_v7  ;;  %vm30_vm6 = vcmp.lt.s32.totalorder %v802_v1, 0 }
  0x37   :  { %v428_v31 = vadd.s32 %v427_v56, %v417_v48  ;;  %vm924_vm7 = vcmp.le.f32.partialorder %v28_v3, 0.7853982  ;;  %v152_v56 = vsub.s32 4, %v899_v32  ;;  %vm945_vm10 = vcmp.le.f32.partialorder %v359_v9, 0.7853982  ;;  %v752_v9 = vld [vmem:[%s1007_s1 + $0x18] sm:$0xff] }
  0x38   :  { %vm131_vm3 = vcmp.lt.s32.totalorder %v130_v46, 0  ;;  %v132_v55 = vsub.s32 0, %v130_v46  ;;  %v451_v6 = vadd.s32 %v450_v0, %v441_v49  ;;  %v742_v49 = vld [vmem:[%s1006_s0 + $0x10] sm:$0xff]  ;;  %vm361_vm11 = vcmp.lt.s32.totalorder %v809_v5, 0 }
  0x39   :  { %v429_v2 = vadd.s32 %v428_v31, %v419_v53  ;;  %v743_v31 = vld [vmem:[%s1006_s0 + $0x18] sm:$0xff]  ;;  %v13_v0 = vmax.f32 %v742_v49, 1e-07  ;;  %vm171_vm2 = vweird.f32 %v802_v1 }
  0x3a   :  { %v133_v58 = vsel %vm131_vm3, %v132_v55, %v130_v46  ;;  %v455_v10 = vadd.s32 1, %v451_v6 }
  0x3b   :  { %v134_v40 = vclz %v133_v58  ;;  %vm454_vm5 = vc.u32 %v429_v2, %v448_v37  ;;  %v453_v41 = vadd.s32 %v448_v37, %v429_v2  ;;  %v153_v2 = vsel %vm30_vm6, %v152_v56, %v899_v32  ;;  %v751_v32 = vld [vmem:[%s1007_s1 + $0x10] sm:$0xff] }
  0x3c   :  { %v456_v14 = vsel %vm454_vm5, %v455_v10, %v451_v6  ;;  %v17_v37 = vmax.f32 %v743_v31, 1e-07 }
  0x3d   :  { %v746_v4 = vadd.s32 4294967294, %v134_v40  ;;  %v457_v17 = vadd.s32 %v456_v14, %v452_v45 }
  0x3f   :  { %vm747_vm4 = vcmp.lt.s32.totalorder %v746_v4, 0  ;;  %v458_v20 = vadd.s32 536870912, %v457_v17 }
  0x40   :  { %v137_v11 = vsel %vm747_vm4, 0, %v746_v4 }
  0x41   :  { %v138_v36 = vsub.s32 32, %v137_v11  ;;  %v139_v12 = vshll.u32 %v130_v46, %v137_v11  ;;  %v142_v13 = vsub.s32 4294967266, %v137_v11  ;;  %v459_v54 = vshrl.u32 %v458_v20, 30 }
  0x43   :  { %v140_v18 = vshrl.u32 %v122_v8, %v138_v36  ;;  %v143_v60 = vadd.s32 127, %v142_v13  ;;  %v460_v22 = vshll.u32 %v459_v54, 30  ;;  %v483_v7 = vsub.s32 4, %v459_v54 }
  0x44   :  { %v155_v8 = vsel %vm924_vm7, 0, %v153_v2  ;;  %v957_v13 = vmin.f32 %v17_v37, 10000000.0 }
  0x45   :  { %v141_v15 = vor.u32 %v140_v18, %v139_v12  ;;  %v144_v16 = vshll.u32 %v143_v60, 23  ;;  %v461_v26 = vsub.s32 %v457_v17, %v460_v22  ;;  %v955_v12 = vmin.f32 %v13_v0, 10000000.0 }
  0x46   :  { %v326_v18 = vadd.s32 3, %v155_v8  ;;  %v344_v60 = vmax.f32 %v751_v32, 1e-07  ;;  %v484_v14 = vsel %vm361_vm11, %v483_v7, %v459_v54  ;;  %v172_v20 = vand.u32 3, %v155_v8 }
  0x47   :  { %v145_v63 = vor.u32 4788187, %v144_v16  ;;  %v148_v19 = vcvt.s32.f32 %v141_v15  ;;  %vm462_vm8 = vcmp.lt.s32.totalorder %v461_v26, 0  ;;  %v463_v30 = vsub.s32 0, %v461_v26 }
  0x48   :  { %v486_v22 = vsel %vm945_vm10, 0, %v484_v14  ;;  %vm174_vm12 = vcmp.eq.s32.totalorder %v172_v20, 0  ;;  %vm177_vm13 = vcmp.eq.s32.totalorder %v172_v20, 2  ;;  %vm173_vm14 = vcmp.lt.s32.totalorder %v172_v20, 2 }
  0x49   :  { %v146_v21 = vand.u32 2147483647, %v145_v63  ;;  %v464_v35 = vsel %vm462_vm8, %v463_v30, %v461_v26 }
  0x4a   :  { %v465_v27 = vclz %v464_v35 }
  0x4b   :  { %v149_v61 = vmul.f32 %v148_v19, %v146_v21  ;;  %v19_v19 = vmul.f32 %v955_v12, %v955_v12  ;;  %v348_v21 = vmax.f32 %v752_v9, 1e-07 }
  0x4c   :  { %v755_v3 = vadd.s32 4294967294, %v465_v27  ;;  %v657_v27 = vadd.s32 3, %v486_v22 }
  0x4d   :  { %v150_v59 = vxor.u32 2147483648, %v149_v61  ;;  %v973_v35 = vmin.f32 %v348_v21, 10000000.0 }
  0x4e   :  { %vm756_vm9 = vcmp.lt.s32.totalorder %v755_v3, 0 }
  0x4f   :  { %v151_v28 = vsel %vm30_vm6, %v150_v59, %v149_v61  ;;  %v468_v43 = vsel %vm756_vm9, 0, %v755_v3  ;;  %v20_v61 = vmul.f32 %v957_v13, %v957_v13  ;;  %v327_v59 = vand.u32 3, %v326_v18 }
  0x50   :  { %v154_v34 = vsel %vm924_vm7, %v802_v1, %v151_v28  ;;  %v469_v46 = vsub.s32 32, %v468_v43  ;;  %v470_v48 = vshll.u32 %v461_v26, %v468_v43  ;;  %v473_v50 = vsub.s32 4294967266, %v468_v43 }
  0x51   :  { %v156_v25 = vmul.f32 %v154_v34, %v154_v34  ;;  %v971_v26 = vmin.f32 %v344_v60, 10000000.0  ;;  %vm329_vm15 = vcmp.eq.s32.totalorder %v327_v59, 0  ;;  %vm332_vm0 = vcmp.eq.s32.totalorder %v327_v59, 2 }
  0x52   :  { %v471_v51 = vshrl.u32 %v453_v41, %v469_v46  ;;  %v474_v52 = vadd.s32 127, %v473_v50  ;;  %vm328_vm1 = vcmp.lt.s32.totalorder %v327_v59, 2  ;;  %v351_v46 = vmul.f32 %v973_v35, %v973_v35 }
  0x53   :  { %v157_v38 = vmul.f32 -0.001358992, %v156_v25  ;;  %v164_v33 = vmul.f32 -0.00019511016, %v156_v25  ;;  %v658_v50 = vand.u32 3, %v657_v27  ;;  %vm502_vm9 = vweird.f32 %v809_v5 }
  0x54   :  { %v472_v55 = vor.u32 %v471_v51, %v470_v48  ;;  %v475_v53 = vshll.u32 %v474_v52, 23  ;;  %v503_v48 = vand.u32 3, %v486_v22  ;;  %v341_v59 = vmul.f32 %v957_v13, %v955_v12  ;;  %v673_v12 = vld [vmem:[%s1006_s0] sm:$0xff] }
  0x55   :  { %v165_v39 = vadd.f32 0.008332121, %v164_v33  ;;  %v158_v42 = vadd.f32 0.041655596, %v157_v38  ;;  %v23_v38 = vsub.f32 %v19_v19, %v20_v61  ;;  %vm663_vm4 = vcmp.eq.s32.totalorder %v658_v50, 2  ;;  %v674_v13 = vld [vmem:[%s1007_s1] sm:$0xff] }
  0x56   :  { %v476_v57 = vor.u32 4788187, %v475_v53  ;;  %v479_v58 = vcvt.s32.f32 %v472_v55  ;;  %v21_v53 = vadd.f32 %v20_v61, %v19_v19  ;;  %vm508_vm3 = vcmp.eq.s32.totalorder %v503_v48, 2 }
  0x57   :  { %v166_v44 = vmul.f32 %v165_v39, %v156_v25  ;;  %v159_v29 = vmul.f32 %v158_v42, %v156_v25  ;;  %v350_v39 = vmul.f32 %v971_v26, %v971_v26  ;;  %v24_v56 = vmul.f32 0.125, %v23_v38 }
  0x58   :  { %v477_v62 = vand.u32 2147483647, %v476_v57  ;;  %vm504_vm5 = vcmp.lt.s32.totalorder %v503_v48, 2  ;;  %vm505_vm6 = vcmp.eq.s32.totalorder %v503_v48, 0  ;;  %vm659_vm7 = vcmp.lt.s32.totalorder %v658_v50, 2 }
  0x59   :  { %v167_v23 = vadd.f32 -0.16666654, %v166_v44  ;;  %v160_v40 = vadd.f32 -0.4999988, %v159_v29  ;;  %v354_v31 = vsub.f32 %v350_v39, %v351_v46  ;;  %vm660_vm8 = vcmp.eq.s32.totalorder %v658_v50, 0 }
  0x5a   :  { %v480_v4 = vmul.f32 %v479_v58, %v477_v62  ;;  %v22_v7 = vmul.f32 0.125, %v21_v53 }
  0x5b   :  { %v168_v47 = vmul.f32 %v167_v23, %v156_v25  ;;  %v161_v10 = vmul.f32 %v160_v40, %v156_v25 }
  0x5c   :  { %v481_v36 = vxor.u32 2147483648, %v480_v4 }
  0x5d   :  { %v169_v11 = vadd.f32 1.0, %v168_v47  ;;  %v162_v16 = vadd.f32 1.0, %v161_v10  ;;  %v352_v47 = vadd.f32 %v351_v46, %v350_v39  ;;  %v355_v10 = vmul.f32 0.125, %v354_v31 }
  0x5e   :  { %v482_v45 = vsel %vm361_vm11, %v481_v36, %v480_v4  ;;  %v675_v46 = vsub.f32 %v673_v12, %v674_v13 }
  0x5f   :  { %v485_v15 = vsel %vm945_vm10, %v809_v5, %v482_v45  ;;  %v170_v17 = vmul.f32 %v169_v11, %v154_v34  ;;  %v178_v30 = vxor.u32 2147483648, %v162_v16  ;;  %v353_v9 = vmul.f32 0.125, %v352_v47 }
  0x60   :  { %v487_v63 = vmul.f32 %v485_v15, %v485_v15 }
  0x61   :  { %v175_v28 = vxor.u32 2147483648, %v170_v17  ;;  %v179_v42 = vsel %vm177_vm13, %v178_v30, %v170_v17  ;;  %v334_v52 = vsel %vm332_vm0, %v178_v30, %v170_v17 }
  0x62   :  { %v488_v24 = vmul.f32 -0.001358992, %v487_v63  ;;  %v495_v54 = vmul.f32 -0.00019511016, %v487_v63 }
  0x63   :  { %v176_v41 = vsel %vm174_vm12, %v162_v16, %v175_v28  ;;  %v331_v51 = vsel %vm329_vm15, %v162_v16, %v175_v28 }
  0x64   :  { %v489_v34 = vadd.f32 0.041655596, %v488_v24  ;;  %v496_v25 = vadd.f32 0.008332121, %v495_v54  ;;  %v180_v55 = vsel %vm173_vm14, %v176_v41, %v179_v42  ;;  %v335_v58 = vsel %vm328_vm1, %v331_v51, %v334_v52 }
  0x65   :  { %v181_v40 = vsel %vm171_vm2, nan, %v180_v55  ;;  %v336_v2 = vsel %vm171_vm2, nan, %v335_v58  ;;  %vm783_vm14 = vmmov 1   ;;  %v676_v51 = vand.u32 2147483647, %v675_v46 }
  0x66   :  { %v490_v33 = vmul.f32 %v489_v34, %v487_v63  ;;  %v497_v3 = vmul.f32 %v496_v25, %v487_v63  ;;  %v337_v8 = vmul.f32 %v181_v40, %v24_v56  ;;  %v339_v36 = vmul.f32 %v336_v2, %v24_v56 }
  0x67   :  { %v672_v34 = vmul.f32 %v973_v35, %v971_v26  ;;  %v700_v25 = vmul.f32 0.25, %v341_v59  ;;  %v760_v26 = vld [vmem:[%s1006_s0 + $0x8] sm:$0xff]  ;;  %v762_v31 = vadd.f32 -0.055555556, %v676_v51  ;;  %vm683_vm2 = vcmp.lt.f32.partialorder %v676_v51, 0.11111111 }
  0x68   :  { %v491_v43 = vadd.f32 -0.4999988, %v490_v33  ;;  %v498_v44 = vadd.f32 -0.16666654, %v497_v3  ;;  %v340_v1 = vsub.f32 %v22_v7, %v337_v8  ;;  %v761_v35 = vld [vmem:[%s1007_s1 + $0x8] sm:$0xff] }
  0x69   :  { %v701_v33 = vmul.f32 %v700_v25, %v672_v34  ;;  %v716_v42 = vadd.f32 %v672_v34, %v341_v59  ;;  %v681_v48 = vsub.f32 %v760_v26, %v761_v35 }
  0x6a   :  { %v492_v29 = vmul.f32 %v491_v43, %v487_v63  ;;  %v499_v23 = vmul.f32 %v498_v44, %v487_v63 }
  0x6b   :  { %v682_v52 = vand.u32 2147483647, %v681_v48 }
  0x6c   :  { %v493_v49 = vadd.f32 1.0, %v492_v29  ;;  %v500_v57 = vadd.f32 1.0, %v499_v23  ;;  %v684_v23 = vmul.f32 4.5, %v676_v51 }
  0x6d   :  { %v689_v55 = vmul.f32 4.5, %v682_v52  ;;  %v763_v47 = vadd.f32 -0.055555556, %v682_v52 }
  0x6e   :  { %v501_v62 = vmul.f32 %v500_v57, %v485_v15  ;;  %v509_v0 = vxor.u32 2147483648, %v493_v49  ;;  %v338_v15 = vadd.f32 %v337_v8, %v22_v7  ;;  %v685_v58 = vmul.f32 %v684_v23, %v676_v51 }
  0x6f   :  { %v690_v40 = vmul.f32 %v689_v55, %v682_v52 }
  0x70   :  { %v506_v37 = vxor.u32 2147483648, %v501_v62  ;;  %v510_v4 = vsel %vm508_vm3, %v509_v0, %v501_v62  ;;  %v665_v6 = vsel %vm663_vm4, %v509_v0, %v501_v62  ;;  %vm688_vm3 = vcmp.lt.f32.partialorder %v682_v52, 0.11111111 }
  0x72   :  { %v507_v11 = vsel %vm505_vm6, %v493_v49, %v506_v37  ;;  %v662_v32 = vsel %vm660_vm8, %v493_v49, %v506_v37  ;;  %v687_v37 = vsel %vm683_vm2, %v685_v58, %v762_v31 }
  0x73   :  { %v511_v45 = vsel %vm504_vm5, %v507_v11, %v510_v4  ;;  %v666_v18 = vsel %vm659_vm7, %v662_v32, %v665_v6  ;;  %v692_v4 = vsel %vm688_vm3, %v690_v40, %v763_v47 }
  0x74   :  { %v512_v60 = vsel %vm502_vm9, nan, %v511_v45  ;;  %v667_v14 = vsel %vm502_vm9, nan, %v666_v18  ;;  %v693_v8 = vadd.f32 %v692_v4, %v687_v37 }
  0x75   :  { %v668_v16 = vmul.f32 %v512_v60, %v355_v10  ;;  %v670_v17 = vmul.f32 %v667_v14, %v355_v10 }
  0x77   :  { %v669_v63 = vadd.f32 %v668_v16, %v353_v9  ;;  %v671_v19 = vsub.f32 %v353_v9, %v668_v16  ;;  %v695_v20 = vadd.f32 %v670_v17, %v339_v36 }
  0x79   :  { %v694_v21 = vadd.f32 %v669_v63, %v338_v15  ;;  %v696_v61 = vadd.f32 %v671_v19, %v340_v1  ;;  %v698_v22 = vmul.f32 %v695_v20, %v695_v20 }
  0x7b   :  { %v697_v5 = vmul.f32 %v696_v61, %v694_v21 }
  0x7d   :  { %v699_v24 = vsub.f32 %v697_v5, %v698_v22 }
  0x7f   :  { %772 = vrsqrt.f32 %v699_v24  ;;  %vm708_vm10 = vweird.f32 %v699_v24 }
  0x85   :  { %v773_v54 = vpop.eup %772 }
  0x86   :  { %v703_v28 = vmul.f32 %v773_v54, %v699_v24  ;;  %vm709_vm11 = vweird.f32 %v773_v54 }
  0x87   :  { %vm710_vm12 = vmor %vm708_vm10, %vm709_vm11 }
  0x88   :  { %v704_v30 = vmul.f32 %v773_v54, %v703_v28 }
  0x8a   :  { %v705_v27 = vmul.f32 0.5, %v704_v30 }
  0x8c   :  { %v706_v38 = vsub.f32 1.5, %v705_v27 }
  0x8e   :  { %v707_v3 = vmul.f32 %v773_v54, %v706_v38 }
  0x90   :  { %v711_v39 = vsel %vm710_vm12, %v773_v54, %v707_v3 }
  0x91   :  { %v712_v41 = vmul.f32 %v711_v39, %v701_v33 }
  0x93   :  { %vm713_vm13 = vweird.f32 %v712_v41 }
  0x94   :  { %vm714_vm15 = vmxor %vm713_vm13, %vm783_vm14 }
  0x95   :  { %v715_v43 = vsel %vm714_vm15, %v712_v41, 0.0 }
  0x96   :  { %v717_v44 = vsub.f32 %v716_v42, %v715_v43 }
  0x98   :  { %v718_v50 = vadd.f32 1e-06, %v717_v44 }
  0x9a   :  { %774 = vrcp.f32 %v718_v50  ;;  %v730_v56 = vand.u32 2147483648, %v718_v50  ;;  %vm724_vm0 = vweird.f32 %v718_v50  ;;  %v728_v57 = vand.u32 2147483647, %v718_v50 }
  0x9c   :  { %v731_v0 = vor.u32 1.1754944e-38, %v730_v56  ;;  %vm729_vm5 = vcmp.eq.f32.partialorder %v728_v57, 8.507059e+37 }
  0xa0   :  { %v775_v29 = vpop.eup %774 }
  0xa1   :  { %v720_v53 = vmul.f32 %v775_v29, %v718_v50  ;;  %vm725_vm1 = vweird.f32 %v775_v29 }
  0xa2   :  { %vm726_vm4 = vmor %vm724_vm0, %vm725_vm1 }
  0xa3   :  { %v721_v49 = vsub.f32 1.0, %v720_v53 }
  0xa5   :  { %v722_v62 = vmul.f32 %v775_v29, %v721_v49 }
  0xa7   :  { %v723_v2 = vadd.f32 %v775_v29, %v722_v62 }
  0xa9   :  { %v727_v6 = vsel %vm726_vm4, %v775_v29, %v723_v2 }
  0xaa   :  { %v732_v7 = vsel %vm729_vm5, %v731_v0, %v727_v6 }
  0xab   :  { %v733_v10 = vmul.f32 %v732_v7, %v715_v43 }
  0xad   :  { %v734_v11 = vsub.f32 1.0, %v733_v10 }
  0xaf   :  { %v735_v32 = vadd.f32 %v734_v11, %v693_v8 }
  0xb1   :  { %v736_v36 = vmax.f32 %v735_v32, 0.0 }
  0xb3   :  { %737 = vst [vmem:[%s1008_s2] sm:$0xff] %v736_v36 }

</bundles_post_ra>
